<compile_context>
chip_gen: v7x
topology: tpu7x:2x2x1
jax: 0.10.0
libtpu: 0.0.40
codegen_flags: <defaults>
</compile_context>

<pallas_src>
import math
import jax
import jax.numpy as jnp
from jax.experimental import pallas as pl
from jax.experimental.pallas import tpu as pltpu

D_MODEL = 32
N_HEADS = 4
D_FFN = 64
HEAD_DIM = D_MODEL // N_HEADS
EPS = 1e-6

LANES = 128
_SUBLANES = 8


def _round_up(n, m):
    return ((n + m - 1) // m) * m


# ----------------------------------------------------------------------------
# Packed-weight slab layout: (name, rows, cols); every block starts on a
# sublane-aligned (multiple of 8) row so in-kernel static slices are tile-aligned.
# ----------------------------------------------------------------------------
_WEIGHT_LAYOUT = (
    ("attn_norm_w", 1, D_MODEL),
    ("wqkv_t", D_MODEL, 3 * D_MODEL),
    ("bqkv", 1, 3 * D_MODEL),
    ("wo_t", D_MODEL, D_MODEL),
    ("bo", 1, D_MODEL),
    ("ffn_norm_w", 1, D_MODEL),
    ("w12_t", D_MODEL, 2 * D_FFN),     # fused W1|W2, lane width exactly 128
    ("b12", 1, 2 * D_FFN),
    ("w3_t", D_FFN, D_MODEL),
    ("b3", 1, D_MODEL),
)


def _build_weight_offsets():
    offsets = {}
    r = 0
    for name, rows, cols in _WEIGHT_LAYOUT:
        offsets[name] = (r, rows, cols)
        r += _round_up(rows, _SUBLANES)
    return offsets, _round_up(r, _SUBLANES)


_W_OFFSETS, _W_TOTAL_ROWS = _build_weight_offsets()


def _rms_norm(x, w):
    # F.rms_norm: x * rsqrt(mean(x^2, -1) + eps) * weight
    ms = jnp.mean(x * x, axis=-1, keepdims=True)
    return x * jax.lax.rsqrt(ms + EPS) * w


def block_kernel(x_ref, w_ref, o_ref):
    Bb, S, _ = x_ref.shape
    M = Bb * S

    def w(name):
        r0, rows, cols = _W_OFFSETS[name]
        return w_ref[r0:r0 + rows, :cols]

    # (Bb, S, D) -> (M, D): all row-wise ops run on one big 2-D slab.
    x = x_ref[...].astype(jnp.float32).reshape(M, D_MODEL)

    # ---------------- attention branch ----------------
    h = _rms_norm(x, w("attn_norm_w"))                                        # (M, D)
    qkv = jnp.dot(h, w("wqkv_t"),
                  preferred_element_type=jnp.float32) + w("bqkv")             # (M, 3D)
    qkv3 = qkv.reshape(Bb, S, 3 * D_MODEL)                                    # (Bb, S, 3D)

    wo_t = w("wo_t")                                                          # (D, D)
    scale = 1.0 / math.sqrt(HEAD_DIM)
    attn = jnp.zeros((M, D_MODEL), jnp.float32)
    for hd in range(N_HEADS):                                                 # static unroll
        q_h = qkv3[..., hd * HEAD_DIM:(hd + 1) * HEAD_DIM]                    # (Bb, S, hd)
        k_h = qkv3[..., D_MODEL + hd * HEAD_DIM:D_MODEL + (hd + 1) * HEAD_DIM]
        v_h = qkv3[..., 2 * D_MODEL + hd * HEAD_DIM:2 * D_MODEL + (hd + 1) * HEAD_DIM]

        s = jnp.einsum("bqd,bkd->bqk", q_h, k_h,
                       preferred_element_type=jnp.float32) * scale            # (Bb, S, S)
        s = s - jnp.max(s, axis=-1, keepdims=True)
        p = jnp.exp(s)
        p = p * pl.reciprocal(jnp.sum(p, axis=-1, keepdims=True), approx=True)
        o_h = jnp.einsum("bqk,bkd->bqd", p, v_h,
                         preferred_element_type=jnp.float32)                  # (Bb, S, hd)
        # Fold this head straight into the output projection (no lane-concat of heads).
        attn = attn + jnp.dot(o_h.reshape(M, HEAD_DIM),
                              wo_t[hd * HEAD_DIM:(hd + 1) * HEAD_DIM, :],
                              preferred_element_type=jnp.float32)
    x = x + attn + w("bo")

    # ---------------- ffn branch ----------------
    h = _rms_norm(x, w("ffn_norm_w"))
    g12 = jnp.dot(h, w("w12_t"),
                  preferred_element_type=jnp.float32) + w("b12")              # (M, 128)
    a = g12[:, :D_FFN]
    b = g12[:, D_FFN:]
    g = a * jax.nn.sigmoid(a) * b                                             # silu(w1 x) * (w2 x)
    ffn = jnp.dot(g, w("w3_t"), preferred_element_type=jnp.float32) + w("b3")
    x = x + ffn

    o_ref[...] = x.reshape(Bb, S, D_MODEL).astype(o_ref.dtype)


def pack_weights(params):
    """Pack all weights/biases into one sublane-aligned (rows, 128) f32 slab."""
    fused = dict(params)
    fused["w12_t"] = jnp.concatenate([params["w1_t"], params["w2_t"]], axis=1)  # (D, 2*D_FFN)
    fused["b12"] = jnp.concatenate([params["b1"], params["b2"]], axis=0)        # (2*D_FFN,)
    slab = jnp.zeros((_W_TOTAL_ROWS, LANES), jnp.float32)
    for name, rows, cols in _WEIGHT_LAYOUT:
        r0, _, _ = _W_OFFSETS[name]
        slab = slab.at[r0:r0 + rows, :cols].set(
            fused[name].astype(jnp.float32).reshape(rows, cols))
    return slab


def _choose_block_batch(B, S, target_rows=4096):
    """Largest divisor of B whose (Bb*S)-row slab stays at/below ~target_rows rows.

    target_rows=4096 keeps the per-step f32 footprint (input/output double-buffers +
    qkv/ffn intermediates) around ~10 MiB, comfortably inside the 32 MiB scoped VMEM
    default on v5e/v6e/v7x; on v5e/v6e it can be raised further if desired.
    """
    best = 1
    for bb in range(1, B + 1):
        if B % bb == 0 and bb * S <= max(S, target_rows):
            best = bb
    return best


def block_forward(x, params, block_batch=None):
    B, S, D = x.shape
    assert D == D_MODEL
    slab = pack_weights(params)

    Bb = block_batch if block_batch is not None else _choose_block_batch(B, S)
    assert B % Bb == 0
    grid = (B // Bb,)

    return pl.pallas_call(
        block_kernel,
        out_shape=jax.ShapeDtypeStruct((B, S, D), x.dtype),
        grid_spec=pltpu.PrefetchScalarGridSpec(
            num_scalar_prefetch=0,
            grid=grid,
            in_specs=[
                pl.BlockSpec((Bb, S, D), lambda b: (b, 0, 0)),
                pl.BlockSpec((_W_TOTAL_ROWS, LANES), lambda b: (0, 0)),
            ],
            out_specs=pl.BlockSpec((Bb, S, D), lambda b: (b, 0, 0)),
        ),
        compiler_params=pltpu.CompilerParams(
            dimension_semantics=("parallel",)),
    )(x, slab)


def block_reference(x, params):
    """Pure-JAX reference mirroring the PyTorch Block forward (eval mode)."""
    def rms(t, w):
        return t * jax.lax.rsqrt(jnp.mean(t * t, -1, keepdims=True) + EPS) * w

    B, S, D = x.shape
    h = rms(x, params["attn_norm_w"])
    qkv = h @ params["wqkv_t"] + params["bqkv"]
    q, k, v = qkv[..., :D], qkv[..., D:2 * D], qkv[..., 2 * D:]
    q = q.reshape(B, S, N_HEADS, HEAD_DIM).transpose(0, 2, 1, 3)
    k = k.reshape(B, S, N_HEADS, HEAD_DIM).transpose(0, 2, 1, 3)
    v = v.reshape(B, S, N_HEADS, HEAD_DIM).transpose(0, 2, 1, 3)
    s = jnp.einsum("bhqd,bhkd->bhqk", q, k) / math.sqrt(HEAD_DIM)
    p = jax.nn.softmax(s, axis=-1)
    a = jnp.einsum("bhqk,bhkd->bhqd", p, v).transpose(0, 2, 1, 3).reshape(B, S, D)
    x = x + a @ params["wo_t"] + params["bo"]

    h = rms(x, params["ffn_norm_w"])
    g = jax.nn.silu(h @ params["w1_t"] + params["b1"]) * (h @ params["w2_t"] + params["b2"])
    x = x + g @ params["w3_t"] + params["b3"]
    return x


def init_params(key):
    ks = jax.random.split(key, 8)
    f32 = jnp.float32
    # PyTorch stores Linear weight as (out, in); pre-transpose to (in, out) so the kernel
    # computes x @ W_t + b.
    wqkv = 0.1 * jax.random.normal(ks[0], (3 * D_MODEL, D_MODEL), f32)   # in_proj_weight
    bqkv = 0.05 * jax.random.normal(ks[1], (3 * D_MODEL,), f32)          # in_proj_bias
    wo = 0.1 * jax.random.normal(ks[2], (D_MODEL, D_MODEL), f32)         # out_proj.weight
    bo = 0.05 * jax.random.normal(ks[3], (D_MODEL,), f32)
    w1 = 0.1 * jax.random.normal(ks[4], (D_FFN, D_MODEL), f32)
    w2 = 0.1 * jax.random.normal(ks[5], (D_FFN, D_MODEL), f32)
    w3 = 0.1 * jax.random.normal(ks[6], (D_MODEL, D_FFN), f32)
    b1 = jnp.zeros((D_FFN,), f32)
    b2 = jnp.full((D_FFN,), 0.01, f32)
    b3 = jnp.zeros((D_MODEL,), f32)
    attn_norm_w = jnp.ones((D_MODEL,), f32) + 0.01 * jax.random.normal(ks[7], (D_MODEL,), f32)
    ffn_norm_w = jnp.ones((D_MODEL,), f32)
    return {
        "attn_norm_w": attn_norm_w,
        "wqkv_t": wqkv.T, "bqkv": bqkv,          # (D, 3D), (3D,)
        "wo_t": wo.T, "bo": bo,                  # (D, D),  (D,)
        "ffn_norm_w": ffn_norm_w,
        "w1_t": w1.T, "b1": b1,                  # (D, d_ffn), (d_ffn,)
        "w2_t": w2.T, "b2": b2,
        "w3_t": w3.T, "b3": b3,                  # (d_ffn, D), (D,)
    }


if __name__ == "__main__":
    B, S = 2, 8
    key = jax.random.PRNGKey(0)
    kx, kp = jax.random.split(key)
    x = jax.random.normal(kx, (B, S, D_MODEL), jnp.float32)
    params = init_params(kp)

    out = jax.block_until_ready(block_forward(x, params))
    ref = block_reference(x, params)

    assert out.shape == (B, S, D_MODEL)
    err = float(jnp.max(jnp.abs(out - ref)))
    # 1e-3 tolerance: pl.reciprocal(approx=True) in the softmax introduces ~1e-4-level
    # relative error vs the exact-division reference; real bugs show up as >1e-1.
    assert err < 1e-3, f"kernel mismatch vs reference: {err}"
    print("KERNEL_OK")
</pallas_src>

<mosaic_0001>
module attributes {stable_mosaic.version = 11 : i64} {
  func.func @block_kernel(%arg0: i32, %arg1: memref<2x8x32xf32, #tpu.memory_space<vmem>>, %arg2: memref<208x128xf32, #tpu.memory_space<vmem>>, %arg3: memref<2x8x32xf32, #tpu.memory_space<vmem>>) attributes {dimension_semantics = [#tpu.dimension_semantics<parallel>], iteration_bounds = array<i64: 1>, scalar_prefetch = 0 : i64, scratch_operands = 0 : i64, tpu.core_type = #tpu.core_type<tc>, window_params = [{transform_indices = @transform_0, window_bounds = array<i64: 2, 8, 32>}, {pipeline_mode = #tpu.pipeline_mode<synchronous>, transform_indices = @transform_1, window_bounds = array<i64: 208, 128>}, {transform_indices = @transform_2, window_bounds = array<i64: 2, 8, 32>}]} {
    %c0 = arith.constant 0 : index
    %c0_0 = arith.constant 0 : index
    %c0_1 = arith.constant 0 : index
    %0 = vector.load %arg1[%c0, %c0_0, %c0_1] : memref<2x8x32xf32, #tpu.memory_space<vmem>>, vector<2x8x32xf32>
    %1 = vector.shape_cast %0 : vector<2x8x32xf32> to vector<16x32xf32>
    %c0_2 = arith.constant 0 : index
    %c0_3 = arith.constant 0 : index
    %2 = vector.load %arg2[%c0_2, %c0_3] : memref<208x128xf32, #tpu.memory_space<vmem>>, vector<1x32xf32>
    %3 = arith.mulf %1, %1 : vector<16x32xf32>
    %cst = arith.constant dense<0.000000e+00> : vector<16xf32>
    %4 = vector.multi_reduction <add>, %3, %cst [1] : vector<16x32xf32> to vector<16xf32>
    %5 = vector.shape_cast %4 : vector<16xf32> to vector<16x1xf32>
    %cst_4 = arith.constant 3.200000e+01 : f32
    %6 = vector.broadcast %cst_4 : f32 to vector<16x1xf32>
    %7 = arith.divf %5, %6 : vector<16x1xf32>
    %cst_5 = arith.constant 9.99999997E-7 : f32
    %8 = vector.broadcast %cst_5 : f32 to vector<16x1xf32>
    %9 = arith.addf %7, %8 : vector<16x1xf32>
    %10 = math.rsqrt %9 : vector<16x1xf32>
    %11 = vector.broadcast %10 : vector<16x1xf32> to vector<16x32xf32>
    %12 = arith.mulf %1, %11 : vector<16x32xf32>
    %13 = vector.broadcast %2 : vector<1x32xf32> to vector<16x32xf32>
    %14 = arith.mulf %12, %13 : vector<16x32xf32>
    %c8 = arith.constant 8 : index
    %c0_6 = arith.constant 0 : index
    %15 = vector.load %arg2[%c8, %c0_6] : memref<208x128xf32, #tpu.memory_space<vmem>>, vector<32x96xf32>
    %cst_7 = arith.constant dense<0.000000e+00> : vector<16x96xf32>
    %16 = tpu.matmul %14, %15, %cst_7 {dimension_numbers = #tpu.dot_dimension_numbers<[1], [0], [0], [1], [0, 0, 1, 1], [], []>} : vector<16x32xf32>, vector<32x96xf32>, vector<16x96xf32> -> vector<16x96xf32>
    %c40 = arith.constant 40 : index
    %c0_8 = arith.constant 0 : index
    %17 = vector.load %arg2[%c40, %c0_8] : memref<208x128xf32, #tpu.memory_space<vmem>>, vector<1x96xf32>
    %18 = vector.broadcast %17 : vector<1x96xf32> to vector<16x96xf32>
    %19 = arith.addf %16, %18 : vector<16x96xf32>
    %20 = vector.shape_cast %19 : vector<16x96xf32> to vector<2x8x96xf32>
    %c48 = arith.constant 48 : index
    %c0_9 = arith.constant 0 : index
    %21 = vector.load %arg2[%c48, %c0_9] : memref<208x128xf32, #tpu.memory_space<vmem>>, vector<32x32xf32>
    %cst_10 = arith.constant 0.000000e+00 : f32
    %22 = vector.broadcast %cst_10 : f32 to vector<16x32xf32>
    %23 = vector.extract_strided_slice %20 {offsets = [0, 0, 0], sizes = [2, 8, 8], strides = [1, 1, 1]} : vector<2x8x96xf32> to vector<2x8x8xf32>
    %24 = vector.extract_strided_slice %20 {offsets = [0, 0, 32], sizes = [2, 8, 8], strides = [1, 1, 1]} : vector<2x8x96xf32> to vector<2x8x8xf32>
    %25 = vector.extract_strided_slice %20 {offsets = [0, 0, 64], sizes = [2, 8, 8], strides = [1, 1, 1]} : vector<2x8x96xf32> to vector<2x8x8xf32>
    "tpu.trace_start"() <{level = 10 : i32, message = "bqd,bkd->bqk"}> : () -> ()
    %cst_11 = arith.constant dense<0.000000e+00> : vector<2x8x8xf32>
    %26 = tpu.matmul %23, %24, %cst_11 {dimension_numbers = #tpu.dot_dimension_numbers<[2], [2], [1], [1], [0, 0, 0, 1, 1, 1], [0], [0]>} : vector<2x8x8xf32>, vector<2x8x8xf32>, vector<2x8x8xf32> -> vector<2x8x8xf32>
    "tpu.trace_stop"() : () -> ()
    %cst_12 = arith.constant 0.353553385 : f32
    %27 = vector.broadcast %cst_12 : f32 to vector<2x8x8xf32>
    %28 = arith.mulf %26, %27 : vector<2x8x8xf32>
    %cst_13 = arith.constant dense<0xFF800000> : vector<2x8xf32>
    %29 = vector.multi_reduction <maximumf>, %28, %cst_13 [2] : vector<2x8x8xf32> to vector<2x8xf32>
    %30 = vector.shape_cast %29 : vector<2x8xf32> to vector<2x8x1xf32>
    %31 = vector.broadcast %30 : vector<2x8x1xf32> to vector<2x8x8xf32>
    %32 = arith.subf %28, %31 : vector<2x8x8xf32>
    %33 = math.exp %32 : vector<2x8x8xf32>
    %cst_14 = arith.constant dense<0.000000e+00> : vector<2x8xf32>
    %34 = vector.multi_reduction <add>, %33, %cst_14 [2] : vector<2x8x8xf32> to vector<2x8xf32>
    %35 = vector.shape_cast %34 : vector<2x8xf32> to vector<2x8x1xf32>
    %36 = tpu.reciprocal %35 {approx = true} : vector<2x8x1xf32> -> vector<2x8x1xf32>
    %37 = vector.broadcast %36 : vector<2x8x1xf32> to vector<2x8x8xf32>
    %38 = arith.mulf %33, %37 : vector<2x8x8xf32>
    "tpu.trace_start"() <{level = 10 : i32, message = "bqk,bkd->bqd"}> : () -> ()
    %cst_15 = arith.constant dense<0.000000e+00> : vector<2x8x8xf32>
    %39 = tpu.matmul %38, %25, %cst_15 {dimension_numbers = #tpu.dot_dimension_numbers<[2], [1], [1], [2], [0, 0, 0, 1, 1, 2], [0], [0]>} : vector<2x8x8xf32>, vector<2x8x8xf32>, vector<2x8x8xf32> -> vector<2x8x8xf32>
    "tpu.trace_stop"() : () -> ()
    %40 = vector.shape_cast %39 : vector<2x8x8xf32> to vector<16x8xf32>
    %41 = vector.extract_strided_slice %21 {offsets = [0, 0], sizes = [8, 32], strides = [1, 1]} : vector<32x32xf32> to vector<8x32xf32>
    %cst_16 = arith.constant dense<0.000000e+00> : vector<16x32xf32>
    %42 = tpu.matmul %40, %41, %cst_16 {dimension_numbers = #tpu.dot_dimension_numbers<[1], [0], [0], [1], [0, 0, 1, 1], [], []>} : vector<16x8xf32>, vector<8x32xf32>, vector<16x32xf32> -> vector<16x32xf32>
    %43 = arith.addf %22, %42 : vector<16x32xf32>
    %44 = vector.extract_strided_slice %20 {offsets = [0, 0, 8], sizes = [2, 8, 8], strides = [1, 1, 1]} : vector<2x8x96xf32> to vector<2x8x8xf32>
    %45 = vector.extract_strided_slice %20 {offsets = [0, 0, 40], sizes = [2, 8, 8], strides = [1, 1, 1]} : vector<2x8x96xf32> to vector<2x8x8xf32>
    %46 = vector.extract_strided_slice %20 {offsets = [0, 0, 72], sizes = [2, 8, 8], strides = [1, 1, 1]} : vector<2x8x96xf32> to vector<2x8x8xf32>
    "tpu.trace_start"() <{level = 10 : i32, message = "bqd,bkd->bqk"}> : () -> ()
    %cst_17 = arith.constant dense<0.000000e+00> : vector<2x8x8xf32>
    %47 = tpu.matmul %44, %45, %cst_17 {dimension_numbers = #tpu.dot_dimension_numbers<[2], [2], [1], [1], [0, 0, 0, 1, 1, 1], [0], [0]>} : vector<2x8x8xf32>, vector<2x8x8xf32>, vector<2x8x8xf32> -> vector<2x8x8xf32>
    "tpu.trace_stop"() : () -> ()
    %cst_18 = arith.constant 0.353553385 : f32
    %48 = vector.broadcast %cst_18 : f32 to vector<2x8x8xf32>
    %49 = arith.mulf %47, %48 : vector<2x8x8xf32>
    %cst_19 = arith.constant dense<0xFF800000> : vector<2x8xf32>
    %50 = vector.multi_reduction <maximumf>, %49, %cst_19 [2] : vector<2x8x8xf32> to vector<2x8xf32>
    %51 = vector.shape_cast %50 : vector<2x8xf32> to vector<2x8x1xf32>
    %52 = vector.broadcast %51 : vector<2x8x1xf32> to vector<2x8x8xf32>
    %53 = arith.subf %49, %52 : vector<2x8x8xf32>
    %54 = math.exp %53 : vector<2x8x8xf32>
    %cst_20 = arith.constant dense<0.000000e+00> : vector<2x8xf32>
    %55 = vector.multi_reduction <add>, %54, %cst_20 [2] : vector<2x8x8xf32> to vector<2x8xf32>
    %56 = vector.shape_cast %55 : vector<2x8xf32> to vector<2x8x1xf32>
    %57 = tpu.reciprocal %56 {approx = true} : vector<2x8x1xf32> -> vector<2x8x1xf32>
    %58 = vector.broadcast %57 : vector<2x8x1xf32> to vector<2x8x8xf32>
    %59 = arith.mulf %54, %58 : vector<2x8x8xf32>
    "tpu.trace_start"() <{level = 10 : i32, message = "bqk,bkd->bqd"}> : () -> ()
    %cst_21 = arith.constant dense<0.000000e+00> : vector<2x8x8xf32>
    %60 = tpu.matmul %59, %46, %cst_21 {dimension_numbers = #tpu.dot_dimension_numbers<[2], [1], [1], [2], [0, 0, 0, 1, 1, 2], [0], [0]>} : vector<2x8x8xf32>, vector<2x8x8xf32>, vector<2x8x8xf32> -> vector<2x8x8xf32>
    "tpu.trace_stop"() : () -> ()
    %61 = vector.shape_cast %60 : vector<2x8x8xf32> to vector<16x8xf32>
    %62 = vector.extract_strided_slice %21 {offsets = [8, 0], sizes = [8, 32], strides = [1, 1]} : vector<32x32xf32> to vector<8x32xf32>
    %cst_22 = arith.constant dense<0.000000e+00> : vector<16x32xf32>
    %63 = tpu.matmul %61, %62, %cst_22 {dimension_numbers = #tpu.dot_dimension_numbers<[1], [0], [0], [1], [0, 0, 1, 1], [], []>} : vector<16x8xf32>, vector<8x32xf32>, vector<16x32xf32> -> vector<16x32xf32>
    %64 = arith.addf %43, %63 : vector<16x32xf32>
    %65 = vector.extract_strided_slice %20 {offsets = [0, 0, 16], sizes = [2, 8, 8], strides = [1, 1, 1]} : vector<2x8x96xf32> to vector<2x8x8xf32>
    %66 = vector.extract_strided_slice %20 {offsets = [0, 0, 48], sizes = [2, 8, 8], strides = [1, 1, 1]} : vector<2x8x96xf32> to vector<2x8x8xf32>
    %67 = vector.extract_strided_slice %20 {offsets = [0, 0, 80], sizes = [2, 8, 8], strides = [1, 1, 1]} : vector<2x8x96xf32> to vector<2x8x8xf32>
    "tpu.trace_start"() <{level = 10 : i32, message = "bqd,bkd->bqk"}> : () -> ()
    %cst_23 = arith.constant dense<0.000000e+00> : vector<2x8x8xf32>
    %68 = tpu.matmul %65, %66, %cst_23 {dimension_numbers = #tpu.dot_dimension_numbers<[2], [2], [1], [1], [0, 0, 0, 1, 1, 1], [0], [0]>} : vector<2x8x8xf32>, vector<2x8x8xf32>, vector<2x8x8xf32> -> vector<2x8x8xf32>
    "tpu.trace_stop"() : () -> ()
    %cst_24 = arith.constant 0.353553385 : f32
    %69 = vector.broadcast %cst_24 : f32 to vector<2x8x8xf32>
    %70 = arith.mulf %68, %69 : vector<2x8x8xf32>
    %cst_25 = arith.constant dense<0xFF800000> : vector<2x8xf32>
    %71 = vector.multi_reduction <maximumf>, %70, %cst_25 [2] : vector<2x8x8xf32> to vector<2x8xf32>
    %72 = vector.shape_cast %71 : vector<2x8xf32> to vector<2x8x1xf32>
    %73 = vector.broadcast %72 : vector<2x8x1xf32> to vector<2x8x8xf32>
    %74 = arith.subf %70, %73 : vector<2x8x8xf32>
    %75 = math.exp %74 : vector<2x8x8xf32>
    %cst_26 = arith.constant dense<0.000000e+00> : vector<2x8xf32>
    %76 = vector.multi_reduction <add>, %75, %cst_26 [2] : vector<2x8x8xf32> to vector<2x8xf32>
    %77 = vector.shape_cast %76 : vector<2x8xf32> to vector<2x8x1xf32>
    %78 = tpu.reciprocal %77 {approx = true} : vector<2x8x1xf32> -> vector<2x8x1xf32>
    %79 = vector.broadcast %78 : vector<2x8x1xf32> to vector<2x8x8xf32>
    %80 = arith.mulf %75, %79 : vector<2x8x8xf32>
    "tpu.trace_start"() <{level = 10 : i32, message = "bqk,bkd->bqd"}> : () -> ()
    %cst_27 = arith.constant dense<0.000000e+00> : vector<2x8x8xf32>
    %81 = tpu.matmul %80, %67, %cst_27 {dimension_numbers = #tpu.dot_dimension_numbers<[2], [1], [1], [2], [0, 0, 0, 1, 1, 2], [0], [0]>} : vector<2x8x8xf32>, vector<2x8x8xf32>, vector<2x8x8xf32> -> vector<2x8x8xf32>
    "tpu.trace_stop"() : () -> ()
    %82 = vector.shape_cast %81 : vector<2x8x8xf32> to vector<16x8xf32>
    %83 = vector.extract_strided_slice %21 {offsets = [16, 0], sizes = [8, 32], strides = [1, 1]} : vector<32x32xf32> to vector<8x32xf32>
    %cst_28 = arith.constant dense<0.000000e+00> : vector<16x32xf32>
    %84 = tpu.matmul %82, %83, %cst_28 {dimension_numbers = #tpu.dot_dimension_numbers<[1], [0], [0], [1], [0, 0, 1, 1], [], []>} : vector<16x8xf32>, vector<8x32xf32>, vector<16x32xf32> -> vector<16x32xf32>
    %85 = arith.addf %64, %84 : vector<16x32xf32>
    %86 = vector.extract_strided_slice %20 {offsets = [0, 0, 24], sizes = [2, 8, 8], strides = [1, 1, 1]} : vector<2x8x96xf32> to vector<2x8x8xf32>
    %87 = vector.extract_strided_slice %20 {offsets = [0, 0, 56], sizes = [2, 8, 8], strides = [1, 1, 1]} : vector<2x8x96xf32> to vector<2x8x8xf32>
    %88 = vector.extract_strided_slice %20 {offsets = [0, 0, 88], sizes = [2, 8, 8], strides = [1, 1, 1]} : vector<2x8x96xf32> to vector<2x8x8xf32>
    "tpu.trace_start"() <{level = 10 : i32, message = "bqd,bkd->bqk"}> : () -> ()
    %cst_29 = arith.constant dense<0.000000e+00> : vector<2x8x8xf32>
    %89 = tpu.matmul %86, %87, %cst_29 {dimension_numbers = #tpu.dot_dimension_numbers<[2], [2], [1], [1], [0, 0, 0, 1, 1, 1], [0], [0]>} : vector<2x8x8xf32>, vector<2x8x8xf32>, vector<2x8x8xf32> -> vector<2x8x8xf32>
    "tpu.trace_stop"() : () -> ()
    %cst_30 = arith.constant 0.353553385 : f32
    %90 = vector.broadcast %cst_30 : f32 to vector<2x8x8xf32>
    %91 = arith.mulf %89, %90 : vector<2x8x8xf32>
    %cst_31 = arith.constant dense<0xFF800000> : vector<2x8xf32>
    %92 = vector.multi_reduction <maximumf>, %91, %cst_31 [2] : vector<2x8x8xf32> to vector<2x8xf32>
    %93 = vector.shape_cast %92 : vector<2x8xf32> to vector<2x8x1xf32>
    %94 = vector.broadcast %93 : vector<2x8x1xf32> to vector<2x8x8xf32>
    %95 = arith.subf %91, %94 : vector<2x8x8xf32>
    %96 = math.exp %95 : vector<2x8x8xf32>
    %cst_32 = arith.constant dense<0.000000e+00> : vector<2x8xf32>
    %97 = vector.multi_reduction <add>, %96, %cst_32 [2] : vector<2x8x8xf32> to vector<2x8xf32>
    %98 = vector.shape_cast %97 : vector<2x8xf32> to vector<2x8x1xf32>
    %99 = tpu.reciprocal %98 {approx = true} : vector<2x8x1xf32> -> vector<2x8x1xf32>
    %100 = vector.broadcast %99 : vector<2x8x1xf32> to vector<2x8x8xf32>
    %101 = arith.mulf %96, %100 : vector<2x8x8xf32>
    "tpu.trace_start"() <{level = 10 : i32, message = "bqk,bkd->bqd"}> : () -> ()
    %cst_33 = arith.constant dense<0.000000e+00> : vector<2x8x8xf32>
    %102 = tpu.matmul %101, %88, %cst_33 {dimension_numbers = #tpu.dot_dimension_numbers<[2], [1], [1], [2], [0, 0, 0, 1, 1, 2], [0], [0]>} : vector<2x8x8xf32>, vector<2x8x8xf32>, vector<2x8x8xf32> -> vector<2x8x8xf32>
    "tpu.trace_stop"() : () -> ()
    %103 = vector.shape_cast %102 : vector<2x8x8xf32> to vector<16x8xf32>
    %104 = vector.extract_strided_slice %21 {offsets = [24, 0], sizes = [8, 32], strides = [1, 1]} : vector<32x32xf32> to vector<8x32xf32>
    %cst_34 = arith.constant dense<0.000000e+00> : vector<16x32xf32>
    %105 = tpu.matmul %103, %104, %cst_34 {dimension_numbers = #tpu.dot_dimension_numbers<[1], [0], [0], [1], [0, 0, 1, 1], [], []>} : vector<16x8xf32>, vector<8x32xf32>, vector<16x32xf32> -> vector<16x32xf32>
    %106 = arith.addf %85, %105 : vector<16x32xf32>
    %107 = arith.addf %1, %106 : vector<16x32xf32>
    %c80 = arith.constant 80 : index
    %c0_35 = arith.constant 0 : index
    %108 = vector.load %arg2[%c80, %c0_35] : memref<208x128xf32, #tpu.memory_space<vmem>>, vector<1x32xf32>
    %109 = vector.broadcast %108 : vector<1x32xf32> to vector<16x32xf32>
    %110 = arith.addf %107, %109 : vector<16x32xf32>
    %c88 = arith.constant 88 : index
    %c0_36 = arith.constant 0 : index
    %111 = vector.load %arg2[%c88, %c0_36] : memref<208x128xf32, #tpu.memory_space<vmem>>, vector<1x32xf32>
    %112 = arith.mulf %110, %110 : vector<16x32xf32>
    %cst_37 = arith.constant dense<0.000000e+00> : vector<16xf32>
    %113 = vector.multi_reduction <add>, %112, %cst_37 [1] : vector<16x32xf32> to vector<16xf32>
    %114 = vector.shape_cast %113 : vector<16xf32> to vector<16x1xf32>
    %cst_38 = arith.constant 3.200000e+01 : f32
    %115 = vector.broadcast %cst_38 : f32 to vector<16x1xf32>
    %116 = arith.divf %114, %115 : vector<16x1xf32>
    %cst_39 = arith.constant 9.99999997E-7 : f32
    %117 = vector.broadcast %cst_39 : f32 to vector<16x1xf32>
    %118 = arith.addf %116, %117 : vector<16x1xf32>
    %119 = math.rsqrt %118 : vector<16x1xf32>
    %120 = vector.broadcast %119 : vector<16x1xf32> to vector<16x32xf32>
    %121 = arith.mulf %110, %120 : vector<16x32xf32>
    %122 = vector.broadcast %111 : vector<1x32xf32> to vector<16x32xf32>
    %123 = arith.mulf %121, %122 : vector<16x32xf32>
    %c96 = arith.constant 96 : index
    %c0_40 = arith.constant 0 : index
    %124 = vector.load %arg2[%c96, %c0_40] : memref<208x128xf32, #tpu.memory_space<vmem>>, vector<32x128xf32>
    %cst_41 = arith.constant dense<0.000000e+00> : vector<16x128xf32>
    %125 = tpu.matmul %123, %124, %cst_41 {dimension_numbers = #tpu.dot_dimension_numbers<[1], [0], [0], [1], [0, 0, 1, 1], [], []>} : vector<16x32xf32>, vector<32x128xf32>, vector<16x128xf32> -> vector<16x128xf32>
    %c128 = arith.constant 128 : index
    %c0_42 = arith.constant 0 : index
    %126 = vector.load %arg2[%c128, %c0_42] : memref<208x128xf32, #tpu.memory_space<vmem>>, vector<1x128xf32>
    %127 = vector.broadcast %126 : vector<1x128xf32> to vector<16x128xf32>
    %128 = arith.addf %125, %127 : vector<16x128xf32>
    %129 = vector.extract_strided_slice %128 {offsets = [0, 0], sizes = [16, 64], strides = [1, 1]} : vector<16x128xf32> to vector<16x64xf32>
    %130 = vector.extract_strided_slice %128 {offsets = [0, 64], sizes = [16, 64], strides = [1, 1]} : vector<16x128xf32> to vector<16x64xf32>
    %131 = arith.negf %129 : vector<16x64xf32>
    %132 = math.exp %131 : vector<16x64xf32>
    %cst_43 = arith.constant 1.000000e+00 : f32
    %133 = vector.broadcast %cst_43 : f32 to vector<16x64xf32>
    %134 = arith.addf %133, %132 : vector<16x64xf32>
    %135 = arith.divf %133, %134 : vector<16x64xf32>
    %136 = arith.mulf %129, %135 : vector<16x64xf32>
    %137 = arith.mulf %136, %130 : vector<16x64xf32>
    %c136 = arith.constant 136 : index
    %c0_44 = arith.constant 0 : index
    %138 = vector.load %arg2[%c136, %c0_44] : memref<208x128xf32, #tpu.memory_space<vmem>>, vector<64x32xf32>
    %cst_45 = arith.constant dense<0.000000e+00> : vector<16x32xf32>
    %139 = tpu.matmul %137, %138, %cst_45 {dimension_numbers = #tpu.dot_dimension_numbers<[1], [0], [0], [1], [0, 0, 1, 1], [], []>} : vector<16x64xf32>, vector<64x32xf32>, vector<16x32xf32> -> vector<16x32xf32>
    %c200 = arith.constant 200 : index
    %c0_46 = arith.constant 0 : index
    %140 = vector.load %arg2[%c200, %c0_46] : memref<208x128xf32, #tpu.memory_space<vmem>>, vector<1x32xf32>
    %141 = vector.broadcast %140 : vector<1x32xf32> to vector<16x32xf32>
    %142 = arith.addf %139, %141 : vector<16x32xf32>
    %143 = arith.addf %110, %142 : vector<16x32xf32>
    %144 = vector.shape_cast %143 : vector<16x32xf32> to vector<2x8x32xf32>
    %c0_47 = arith.constant 0 : index
    %c0_48 = arith.constant 0 : index
    %c0_49 = arith.constant 0 : index
    %145 = vector.load %arg3[%c0_47, %c0_48, %c0_49] : memref<2x8x32xf32, #tpu.memory_space<vmem>>, vector<2x8x32xf32>
    tpu.vector_store %arg3[%c0_47, %c0_48, %c0_49], %144 {strides = array<i32>} : memref<2x8x32xf32, #tpu.memory_space<vmem>>, vector<2x8x32xf32>,
    return
  }
  func.func @transform_0(%arg0: i32) -> (i32, i32, i32) {
    %c0_i32 = arith.constant 0 : i32
    %c0_i32_0 = arith.constant 0 : i32
    %c0_i32_1 = arith.constant 0 : i32
    return %arg0, %c0_i32, %c0_i32_0 : i32, i32, i32
  }
  func.func @transform_1(%arg0: i32) -> (i32, i32) {
    %c0_i32 = arith.constant 0 : i32
    %c0_i32_0 = arith.constant 0 : i32
    %c0_i32_1 = arith.constant 0 : i32
    return %c0_i32, %c0_i32_0 : i32, i32
  }
  func.func @transform_2(%arg0: i32) -> (i32, i32, i32) {
    %c0_i32 = arith.constant 0 : i32
    %c0_i32_0 = arith.constant 0 : i32
    %c0_i32_1 = arith.constant 0 : i32
    return %arg0, %c0_i32, %c0_i32_0 : i32, i32, i32
  }
}

</mosaic_0001>

<bundles_post_ra>
// kernel: tpu_custom_call.1
= control target key start
LH: loop header
LB: loop body
LE: loop exit
PB: predicated region body
PF: predicated region fallthrough
CT: control target
= control target key end

     0   :  { %7 = vsyncpa [#allocation3], 0  ;;  %s2754_s0 = inlined_call_operand.hbm [shape: f32[2,8,32], index: 0, kind: input, shape index: {}]   ;;  %s2755_s1 = inlined_call_operand.hbm [shape: f32[208,128], index: 1, kind: input, shape index: {}]   ;;  %s2756_s2 = inlined_call_operand.hbm [shape: f32[2,8,32], index: 2, kind: output, shape index: {}]  }
   0x1   :  { %8 = vsyncpa [#allocation6], 0 }
   0x2   :  { %9 = vsyncpa [#allocation4], 0  ;;  %s2508_s9 = smov [#allocation2]   ;;  %s2436_s13 = scalar_lea.hbm %s2754_s0, 256 }
   0x3   :  { %s15_s10 = sshll.u32 %s2508_s9, 4  ;;  %p2437_p0 = scmp.ne.s32.totalorder %s2754_s0, %s2436_s13  ;;  %s16_s10 = int_to_ptr.vmem [resolvable:$true] %s15_s10 }
   0x4   :  { %p2440_p1 = scmp.lt.u32.totalorder %s2436_s13, %s2754_s0 }
   0x6   :  { %p2442_p2 = pnand %p2440_p1, %p2437_p0 }
   0x8   :  { %2445 = shalt.err (!%p2442_p2)
}
   0x9   :  { %s2446_s18 = scalar_lea.vmem %s16_s10, 256  ;;  %p2451_p4 = scmp.lt.s32.totalorder %s16_s10, %s16_s10 }
   0xa   :  { %p2447_p3 = scmp.ne.s32.totalorder %s16_s10, %s2446_s18  ;;  %p2452_p5 = scmp.lt.s32.totalorder %s2446_s18, %s2446_s18 }
   0xc   :  { %p2453_p6 = por %p2452_p5, %p2451_p4 }
   0xe   :  { %p2454_p7 = pnand %p2453_p6, %p2447_p3 }
  0x10   :  { %2457 = shalt.err (!%p2454_p7)
}
  0x11   :  { %s2509_s19 = smov 128   ;;  %s2510_s20 = smov 8  }
  0x12   :  { %21 = dma.hbm_to_vmem [thread:$0]  %s2754_s0, 256, %s16_s10, [#allocation3], %s2509_s19, %s2509_s19, %s2510_s20  }
  0x13   :  { %s2511_s23 = smov [#allocation5]   ;;  %s2458_s27 = scalar_lea.hbm %s2755_s1, 3328 }
  0x14   :  { %s27_s24 = sshll.u32 %s2511_s23, 4  ;;  %p2459_p8 = scmp.ne.s32.totalorder %s2755_s1, %s2458_s27  ;;  %s28_s24 = int_to_ptr.vmem [resolvable:$true] %s27_s24 }
  0x15   :  { %p2462_p9 = scmp.lt.u32.totalorder %s2458_s27, %s2755_s1 }
  0x17   :  { %p2464_p10 = pnand %p2462_p9, %p2459_p8 }
  0x19   :  { %2467 = shalt.err (!%p2464_p10)
}
  0x1a   :  { %s2468_s4 = scalar_lea.vmem %s28_s24, 3328  ;;  %p2473_p12 = scmp.lt.s32.totalorder %s28_s24, %s28_s24 }
  0x1b   :  { %p2469_p11 = scmp.ne.s32.totalorder %s28_s24, %s2468_s4  ;;  %p2474_p13 = scmp.lt.s32.totalorder %s2468_s4, %s2468_s4 }
  0x1d   :  { %p2475_p0 = por %p2474_p13, %p2473_p12 }
  0x1f   :  { %p2476_p1 = pnand %p2475_p0, %p2469_p11 }
  0x21   :  { %2479 = shalt.err (!%p2476_p1)
}
  0x22   :  { %33 = dma.hbm_to_vmem [thread:$0]  %s2755_s1, 3328, %s28_s24, [#allocation6], %s2509_s19, %s2509_s19, %s2510_s20  }
  0x23   :  { %2502 = dma.done.wait [#allocation3], 256  }
  0x24   :  { %2503 = vsyncadd [#allocation3], 4294967040 }
  0x25   :  { %2504 = dma.done.wait [#allocation6], 3328  }
  0x26   :  { %2505 = vsyncadd [#allocation6], 4294963968  ;;  %v2571_v0 = vld [vmem:[#allocation2] sm:$0xff]  ;;  %vm45_vm0 = vcmask 261120   ;;  %v2573_v1 = vld [vmem:[#allocation2 + $0x8] sm:$0xff]  ;;  %v2512_v25 = vmov 0.0  }
  0x27   :  { %v43_v2 = vmul.f32 %v2571_v0, %v2571_v0  ;;  %v44_v3 = vmul.f32 %v2573_v1, %v2573_v1  ;;  %v67_v6 = vld [vmem:[#allocation5 + $0x8] sm:$0xff]  ;;  %v68_v7 = vld [vmem:[#allocation5 + $0x10] sm:$0xff]  ;;  %v69_v8 = vld [vmem:[#allocation5 + $0x18] sm:$0xff]  ;;  %2212 = vmatprep.subr.mxu0 %v2512_v25  ;;  %vm2513_vm1 = vmmov 0   ;;  %s2514_s1 = smov 96   ;;  %vm164_vm2 = vcmask 64512  }
  0x28   :  { %v2332_v9 = vpack.c.bf16 %v68_v7, %v67_v6  ;;  %v70_v10 = vld [vmem:[#allocation5 + $0x20] sm:$0xff]  ;;  %2214 = vmatprep.mubr.msk.f32.mxu0 %vm2513_vm1, %v2512_v25  ;;  %v2080_v26 = vld [vmem:[#allocation5 + $0x28] ss:$0 sm:$0xff]  ;;  %s2515_s6 = smov 64   ;;  %s2516_s7 = smov 88   ;;  %vm1975_vm3 = vcmask 523264  }
  0x29   :  { %v46_v4 = vsel %vm45_vm0, %v43_v2, 0.0  ;;  %v49_v5 = vsel %vm45_vm0, %v44_v3, 0.0  ;;  %v2336_v11 = vpack.c.bf16 %v70_v10, %v69_v8  ;;  %v2079_v19 = vld [vmem:[#allocation5] ss:$0 sm:$0xff]  ;;  %s2517_s8 = smov 120   ;;  %s2518_s9 = smov 56  }
  0x2a   :  { %47 = vadd.xlane.f32.xlu0 %v46_v4  ;;  %2333 = vmatprep.subr.bf16.mxu1 %v2332_v9  ;;  %s2519_s10 = smov 80   ;;  %s2520_s11 = smov 112  }
  0x2b   :  { %2335 = vmatpush3.bf16.msra.mxu1 %v2332_v9  ;;  %s2521_s12 = smov 48   ;;  %s2522_s13 = smov 72  }
  0x2c   :  { %2337 = vmatprep.subr.bf16.mxu1 %v2336_v11  ;;  %s2523_s14 = smov 104   ;;  %s2524_s15 = smov 40  }
  0x2d   :  { %s2525_s16 = smov [#allocation7]  }
  0x2e   :  { %50 = vadd.xlane.f32.xlu0 %v49_v5  ;;  %s2066_s17 = sshll.u32 %s2525_s16, 4  ;;  %s2067_s17 = int_to_ptr.vmem [resolvable:$true] %s2066_s17 }
  0x2f   :  { %2339 = vmatpush3.bf16.msra.mxu1 %v2336_v11  ;;  %s2480_s18 = scalar_lea.vmem %s2067_s17, 256  ;;  %p2485_p3 = scmp.lt.s32.totalorder %s2067_s17, %s2067_s17 }
  0x30   :  { %2202 = vmatprep.subr.mxu1 %v2512_v25  ;;  %p2481_p2 = scmp.ne.s32.totalorder %s2067_s17, %s2480_s18  ;;  %p2486_p4 = scmp.lt.s32.totalorder %s2480_s18, %s2480_s18 }
  0x32   :  { %p2487_p5 = por %p2486_p4, %p2485_p3 }
  0x34   :  { %p2488_p6 = pnand %p2487_p5, %p2481_p2 }
  0xb7   :  { %v48_v12 = vpop.xlane.xlu0 %47 }
  0xb8   :  { %v53_v13 = vmul.f32 0.03125, %v48_v12 }
  0xba   :  { %v55_v14 = vadd.f32 1e-06, %v53_v13 }
  0xbb   :  { %v51_v15 = vpop.xlane.xlu0 %50 }
  0xbc   :  { %2388 = vrsqrt.f32 %v55_v14  ;;  %v54_v16 = vmul.f32 0.03125, %v51_v15 }
  0xbe   :  { %v56_v17 = vadd.f32 1e-06, %v54_v16 }
  0xc0   :  { %2390 = vrsqrt.f32 %v56_v17 }
  0xc6   :  { %v2389_v18 = vpop.eup %2388 }
  0xc7   :  { %v59_v20 = vmul.f32 %v2389_v18, %v2571_v0 }
  0xc9   :  { %v65_v21 = vmul.f32 %v2079_v19, %v59_v20 }
  0xca   :  { %v2391_v22 = vpop.eup %2390 }
  0xcb   :  { %v60_v23 = vmul.f32 %v2391_v22, %v2573_v1  ;;  %2199 = vmatprep.mubr.msk.f32.mxu1 %vm45_vm0, %v65_v21 }
  0xcd   :  { %v66_v24 = vmul.f32 %v2079_v19, %v60_v23 }
  0xcf   :  { %2200 = vmatmul.mubr.msk.f32.vlgmr.msra.gmra.mrb[0].mxu1 %vm45_vm0, %v66_v24 }
  0xd0   :  { %2204 = vmatprep.mubr.msk.f32.mxu1 %vm2513_vm1, %v2512_v25 }
 0x1a2   :  { %v2201_v27 = vpop.f32.mrb[0].mxu1 }
 0x1a3   :  { %v148_v28 = vpop.f32.mrb[1].mxu1  ;;  %v2594_v30 = vadd.f32 %v2201_v27, %v2080_v26 }
 0x1a4   :  { %v2591_v29 = vadd.f32 %v2080_v26, %v148_v28 }
 0x1a6   :  { %162 = vrot.lane.b32.xlu1 %v2591_v29, %s2514_s1 }
 0x1aa   :  { %240 = vrot.lane.b32.xlu1 %v2594_v30, %s2514_s1 }
 0x218   :  { %v163_v31 = vpop.permute.xlu1 %162 }
 0x219   :  { %2203 = vmatpush3.xpose.msk.msra.mxu1 %vm164_vm2, %v163_v31 }
 0x21a   :  { %2207 = vmatprep.subr.mxu1 %v2512_v25 }
 0x21c   :  { %2205 = vmatmul.mubr.msk.f32.vlgmr.msra.gmra.mrb[2].mxu1 %vm164_vm2, %v2591_v29  ;;  %v241_v32 = vpop.permute.xlu1 %240 }
 0x21d   :  { %2208 = vmatpush3.xpose.msk.msra.mxu1 %vm164_vm2, %v241_v32  ;;  %2209 = vmatprep.mubr.msk.f32.mxu1 %vm2513_vm1, %v2512_v25 }
 0x21e   :  { %2217 = vmatprep.subr.mxu1 %v2512_v25 }
 0x220   :  { %2210 = vmatmul.mubr.msk.f32.vlgmr.msra.gmra.mrb[4].mxu1 %vm164_vm2, %v2594_v30 }
 0x221   :  { %2219 = vmatprep.mubr.msk.f32.mxu1 %vm2513_vm1, %v2512_v25 }
 0x2ef   :  { %v235_v33 = vpop.f32.mrb[2].mxu1 }
 0x2f0   :  { %v2206_v34 = vpop.f32.mrb[3].mxu1  ;;  %v316_v39 = vmul.f32 0.35355338, %v235_v33 }
 0x2f2   :  { %v318_v40 = vsel %vm164_vm2, %v316_v39, -inf }
 0x2f3   :  { %v312_v35 = vpop.f32.mrb[4].mxu1 }
 0x2f4   :  { %v317_v36 = vmul.f32 0.35355338, %v312_v35  ;;  %v2211_v37 = vpop.f32.mrb[5].mxu1 }
 0x2f6   :  { %v321_v38 = vsel %vm164_vm2, %v317_v36, -inf }
 0x2f7   :  { %322 = vmax.xlane.f32.xlu0 %v321_v38  ;;  %v158_v38 = vld [vmem:[#allocation5 + $0x38] sm:$0xff] }
 0x30d   :  { %416 = vrot.lane.b32.xlu0 %v2594_v30, %s2515_s6 }
 0x311   :  { %572 = vrot.lane.b32.xlu0 %v2594_v30, %s2516_s7 }
 0x315   :  { %570 = vrot.lane.b32.xlu0 %v2594_v30, %s2517_s8 }
 0x334   :  { %319 = vmax.xlane.f32.xlu0 %v318_v40 }
 0x384   :  { %v323_v41 = vpop.xlane.xlu0 %322 }
 0x385   :  { %v325_v42 = vsub.f32 %v317_v36, %v323_v41 }
 0x387   :  { %v328_v43 = vmul.f32 1.442695, %v325_v42 }
 0x388   :  { %v417_v44 = vpop.permute.xlu0 %416 }
 0x389   :  { %2392 = vpow2.f32 %v328_v43  ;;  %2218 = vmatpush3.msra.mxu1 %v417_v44 }
 0x38a   :  { %2227 = vmatprep.subr.mxu1 %v2512_v25 }
 0x38c   :  { %v573_v47 = vpop.permute.xlu0 %572 }
 0x390   :  { %v571_v48 = vpop.permute.xlu0 %570 }
 0x393   :  { %v2393_v45 = vpop.eup %2392 }
 0x394   :  { %v333_v46 = vsel %vm164_vm2, %v2393_v45, 0.0 }
 0x395   :  { %334 = vadd.xlane.f32.xlu1 %v333_v46 }
 0x3c1   :  { %v320_v49 = vpop.xlane.xlu0 %319 }
 0x3c2   :  { %v324_v50 = vsub.f32 %v316_v39, %v320_v49  ;;  %v157_v39 = vld [vmem:[#allocation5 + $0x30] sm:$0xff] }
 0x3c4   :  { %v326_v51 = vmul.f32 1.442695, %v324_v50 }
 0x3c6   :  { %2394 = vpow2.f32 %v326_v51 }
 0x3d0   :  { %v2395_v52 = vpop.eup %2394 }
 0x3d1   :  { %v330_v53 = vsel %vm164_vm2, %v2395_v52, 0.0 }
 0x3d2   :  { %331 = vadd.xlane.f32.xlu1 %v330_v53 }
 0x3e3   :  { %340 = vrot.lane.b32.xlu1 %v2591_v29, %s2515_s6 }
 0x3e7   :  { %494 = vrot.lane.b32.xlu1 %v2591_v29, %s2516_s7 }
 0x3eb   :  { %492 = vrot.lane.b32.xlu1 %v2591_v29, %s2517_s8 }
 0x422   :  { %v335_v54 = vpop.xlane.xlu1 %334 }
 0x423   :  { %2396 = vrcp.f32 %v335_v54 }
 0x42d   :  { %v2397_v55 = vpop.eup %2396 }
 0x42e   :  { %v339_v56 = vmul.f32 %v2397_v55, %v2393_v45 }
 0x430   :  { %2220 = vmatmul.mubr.msk.f32.vlgmr.msra.gmra.mrb[6].mxu1 %vm164_vm2, %v339_v56 }
 0x431   :  { %2228 = vmatpush3.xpose.msk.msra.mxu1 %vm164_vm2, %v573_v47  ;;  %2229 = vmatprep.mubr.msk.f32.mxu1 %vm2513_vm1, %v2512_v25 }
 0x432   :  { %2237 = vmatprep.subr.mxu1 %v2512_v25 }
 0x434   :  { %2230 = vmatmul.mubr.msk.f32.vlgmr.msra.gmra.mrb[8].mxu1 %vm164_vm2, %v571_v48 }
 0x435   :  { %2239 = vmatprep.mubr.msk.f32.mxu1 %vm2513_vm1, %v2512_v25 }
 0x45f   :  { %v332_v57 = vpop.xlane.xlu1 %331 }
 0x460   :  { %2398 = vrcp.f32 %v332_v57 }
 0x463   :  { %v341_v58 = vpop.permute.xlu1 %340 }
 0x464   :  { %2213 = vmatpush3.msra.mxu0 %v341_v58 }
 0x465   :  { %2222 = vmatprep.subr.mxu0 %v2512_v25 }
 0x467   :  { %v495_v60 = vpop.permute.xlu1 %494 }
 0x46a   :  { %v2399_v59 = vpop.eup %2398 }
 0x46b   :  { %v338_v61 = vmul.f32 %v2399_v59, %v2395_v52  ;;  %v493_v62 = vpop.permute.xlu1 %492 }
 0x46d   :  { %2215 = vmatmul.mubr.msk.f32.vlgmr.msra.gmra.mrb[0].mxu0 %vm164_vm2, %v338_v61 }
 0x46e   :  { %2223 = vmatpush3.xpose.msk.msra.mxu0 %vm164_vm2, %v495_v60  ;;  %2224 = vmatprep.mubr.msk.f32.mxu0 %vm2513_vm1, %v2512_v25 }
 0x46f   :  { %2232 = vmatprep.subr.mxu0 %v2512_v25 }
 0x471   :  { %2225 = vmatmul.mubr.msk.f32.vlgmr.msra.gmra.mrb[2].mxu0 %vm164_vm2, %v493_v62 }
 0x472   :  { %2234 = vmatprep.mubr.msk.f32.mxu0 %vm2513_vm1, %v2512_v25 }
 0x503   :  { %v2639_v63 = vpop.f32.mrb[6].mxu1 }
 0x504   :  { %v2221_v2 = vpop.f32.mrb[7].mxu1 }
 0x507   :  { %v644_v3 = vpop.f32.mrb[8].mxu1 }
 0x508   :  { %v649_v4 = vmul.f32 0.35355338, %v644_v3  ;;  %v2231_v5 = vpop.f32.mrb[9].mxu1 }
 0x50a   :  { %v653_v6 = vsel %vm164_vm2, %v649_v4, -inf }
 0x50b   :  { %654 = vmax.xlane.f32.xlu0 %v653_v6 }
 0x521   :  { %748 = vrot.lane.b32.xlu0 %v2594_v30, %s2518_s9 }
 0x525   :  { %988 = vrot.lane.b32.xlu0 %v2591_v29, %s2519_s10 }
 0x529   :  { %986 = vrot.lane.b32.xlu0 %v2591_v29, %s2520_s11 }
 0x52d   :  { %1066 = vrot.lane.b32.xlu0 %v2594_v30, %s2519_s10 }
 0x540   :  { %v2646_v7 = vpop.f32.mrb[0].mxu0 }
 0x541   :  { %v2216_v8 = vpop.f32.mrb[1].mxu0 }
 0x544   :  { %v566_v9 = vpop.f32.mrb[2].mxu0 }
 0x545   :  { %v2226_v10 = vpop.f32.mrb[3].mxu0  ;;  %v648_v11 = vmul.f32 0.35355338, %v566_v9 }
 0x547   :  { %v650_v12 = vsel %vm164_vm2, %v648_v11, -inf }
 0x54c   :  { %651 = vmax.xlane.f32.xlu0 %v650_v12 }
 0x562   :  { %672 = vrot.lane.b32.xlu0 %v2591_v29, %s2518_s9 }
 0x598   :  { %v655_v13 = vpop.xlane.xlu0 %654 }
 0x599   :  { %v657_v14 = vsub.f32 %v649_v4, %v655_v13 }
 0x59b   :  { %v660_v15 = vmul.f32 1.442695, %v657_v14 }
 0x59c   :  { %v749_v16 = vpop.permute.xlu0 %748 }
 0x59d   :  { %2400 = vpow2.f32 %v660_v15  ;;  %2238 = vmatpush3.msra.mxu1 %v749_v16 }
 0x59e   :  { %2252 = vmatprep.subr.mxu1 %v2512_v25 }
 0x5a0   :  { %v989_v19 = vpop.permute.xlu0 %988 }
 0x5a4   :  { %v987_v20 = vpop.permute.xlu0 %986 }
 0x5a7   :  { %v2401_v17 = vpop.eup %2400 }
 0x5a8   :  { %v665_v18 = vsel %vm164_vm2, %v2401_v17, 0.0  ;;  %v1067_v21 = vpop.permute.xlu0 %1066 }
 0x5a9   :  { %666 = vadd.xlane.f32.xlu1 %v665_v18 }
 0x5ba   :  { %1064 = vrot.lane.b32.xlu1 %v2594_v30, %s2520_s11 }
 0x5d9   :  { %v652_v22 = vpop.xlane.xlu0 %651 }
 0x5da   :  { %v656_v23 = vsub.f32 %v648_v11, %v652_v22 }
 0x5dc   :  { %v658_v24 = vmul.f32 1.442695, %v656_v23 }
 0x5dd   :  { %v673_v26 = vpop.permute.xlu0 %672 }
 0x5de   :  { %2402 = vpow2.f32 %v658_v24  ;;  %2233 = vmatpush3.msra.mxu0 %v673_v26 }
 0x5df   :  { %2242 = vmatprep.subr.mxu0 %v158_v38 }
 0x5e8   :  { %v2403_v27 = vpop.eup %2402 }
 0x5e9   :  { %v662_v28 = vsel %vm164_vm2, %v2403_v27, 0.0 }
 0x5ea   :  { %663 = vadd.xlane.f32.xlu1 %v662_v28 }
 0x636   :  { %v667_v31 = vpop.xlane.xlu1 %666 }
 0x637   :  { %2404 = vrcp.f32 %v667_v31 }
 0x63a   :  { %v1065_v34 = vpop.permute.xlu1 %1064 }
 0x641   :  { %v2405_v32 = vpop.eup %2404 }
 0x642   :  { %v671_v33 = vmul.f32 %v2405_v32, %v2401_v17 }
 0x644   :  { %2240 = vmatmul.mubr.msk.f32.vlgmr.msra.gmra.mrb[10].mxu1 %vm164_vm2, %v671_v33 }
 0x645   :  { %2253 = vmatpush3.xpose.msk.msra.mxu1 %vm164_vm2, %v989_v19  ;;  %2254 = vmatprep.mubr.msk.f32.mxu1 %vm2513_vm1, %v2512_v25 }
 0x646   :  { %2257 = vmatprep.subr.mxu1 %v2512_v25 }
 0x648   :  { %2255 = vmatmul.mubr.msk.f32.vlgmr.msra.gmra.mrb[12].mxu1 %vm164_vm2, %v987_v20 }
 0x649   :  { %2258 = vmatpush3.xpose.msk.msra.mxu1 %vm164_vm2, %v1067_v21  ;;  %2259 = vmatprep.mubr.msk.f32.mxu1 %vm2513_vm1, %v2512_v25 }
 0x64a   :  { %2267 = vmatprep.subr.mxu1 %v2512_v25 }
 0x64c   :  { %2260 = vmatmul.mubr.msk.f32.vlgmr.msra.gmra.mrb[14].mxu1 %vm164_vm2, %v1065_v34 }
 0x64d   :  { %2269 = vmatprep.mubr.msk.f32.mxu1 %vm2513_vm1, %v2512_v25 }
 0x677   :  { %v664_v35 = vpop.xlane.xlu1 %663 }
 0x678   :  { %2406 = vrcp.f32 %v664_v35 }
 0x682   :  { %v2407_v36 = vpop.eup %2406 }
 0x683   :  { %v670_v37 = vmul.f32 %v2407_v36, %v2403_v27 }
 0x685   :  { %2235 = vmatmul.mubr.msk.f32.vlgmr.msra.gmra.mrb[4].mxu0 %vm164_vm2, %v670_v37 }
 0x686   :  { %2243 = vmatpush3.msra.mxu0 %v158_v38 }
 0x687   :  { %2247 = vmatprep.subr.mxu0 %v157_v39 }
 0x717   :  { %v820_v40 = vpop.f32.mrb[10].mxu1 }
 0x718   :  { %v2241_v41 = vpop.f32.mrb[11].mxu1 }
 0x71b   :  { %v1060_v42 = vpop.f32.mrb[12].mxu1 }
 0x71c   :  { %v1142_v43 = vmul.f32 0.35355338, %v1060_v42  ;;  %v2256_v44 = vpop.f32.mrb[13].mxu1 }
 0x71e   :  { %v1144_v45 = vsel %vm164_vm2, %v1142_v43, -inf }
 0x71f   :  { %1145 = vmax.xlane.f32.xlu1 %v1144_v45  ;;  %v1138_v46 = vpop.f32.mrb[14].mxu1 }
 0x720   :  { %v1143_v47 = vmul.f32 0.35355338, %v1138_v46  ;;  %v2261_v48 = vpop.f32.mrb[15].mxu1 }
 0x722   :  { %v1147_v49 = vsel %vm164_vm2, %v1143_v47, -inf }
 0x723   :  { %1148 = vmax.xlane.f32.xlu0 %v1147_v49  ;;  %v2115_v49 = vld [vmem:[#allocation5 + $0x50] ss:$0 sm:$0xff] }
 0x730   :  { %1166 = vrot.lane.b32.xlu1 %v2591_v29, %s2521_s12 }
 0x739   :  { %1403 = vrot.lane.b32.xlu0 %v2591_v29, %s2522_s13 }
 0x758   :  { %v744_v50 = vpop.f32.mrb[4].mxu0 }
 0x759   :  { %v2236_v51 = vpop.f32.mrb[5].mxu0  ;;  %2244 = vmatprep.mubr.msk.f32.mxu0 %vm164_vm2, %v744_v50 }
 0x75a   :  { %2245 = vmatmul.mubr.msk.f32.vlgmr.msra.gmra.mrb[6].mxu0 %vm164_vm2, %v820_v40 }
 0x75b   :  { %2249 = vmatprep.mubr.msk.f32.mxu0 %vm164_vm2, %v2646_v7  ;;  %2248 = vmatpush3.msra.mxu0 %v157_v39 }
 0x75c   :  { %2262 = vmatprep.subr.mxu0 %v2512_v25 }
 0x762   :  { %2250 = vmatmul.mubr.msk.f32.vlgmr.msra.gmra.mrb[6].mxu0 %vm164_vm2, %v2639_v63  ;;  %v159_v63 = vld [vmem:[#allocation5 + $0x40] sm:$0xff] }
 0x763   :  { %2264 = vmatprep.mubr.msk.f32.mxu0 %vm2513_vm1, %v2512_v25 }
 0x7ac   :  { %v1146_v52 = vpop.xlane.xlu1 %1145 }
 0x7ad   :  { %v1150_v53 = vsub.f32 %v1142_v43, %v1146_v52 }
 0x7af   :  { %v1152_v54 = vmul.f32 1.442695, %v1150_v53 }
 0x7b0   :  { %v1167_v55 = vpop.permute.xlu1 %1166  ;;  %v1149_v56 = vpop.xlane.xlu0 %1148 }
 0x7b1   :  { %2408 = vpow2.f32 %v1152_v54  ;;  %v1151_v57 = vsub.f32 %v1143_v47, %v1149_v56  ;;  %2263 = vmatpush3.msra.mxu0 %v1167_v55 }
 0x7b2   :  { %2272 = vmatprep.subr.mxu0 %v159_v63 }
 0x7b3   :  { %v1154_v58 = vmul.f32 1.442695, %v1151_v57 }
 0x7b4   :  { %v1404_v10 = vpop.permute.xlu0 %1403 }
 0x7b5   :  { %2410 = vpow2.f32 %v1154_v58 }
 0x7bb   :  { %v2409_v59 = vpop.eup %2408 }
 0x7bc   :  { %v1156_v60 = vsel %vm164_vm2, %v2409_v59, 0.0 }
 0x7bd   :  { %1157 = vadd.xlane.f32.xlu1 %v1156_v60  ;;  %v1850_v60 = vld [vmem:[#allocation5 + $0x70] sm:$0xff] }
 0x7bf   :  { %v2411_v61 = vpop.eup %2410 }
 0x7c0   :  { %v1159_v62 = vsel %vm164_vm2, %v2411_v61, 0.0 }
 0x7c1   :  { %1160 = vadd.xlane.f32.xlu1 %v1159_v62 }
 0x7d2   :  { %1242 = vrot.lane.b32.xlu1 %v2594_v30, %s2521_s12 }
 0x7d6   :  { %1481 = vrot.lane.b32.xlu1 %v2594_v30, %s2522_s13 }
 0x7da   :  { %1401 = vrot.lane.b32.xlu1 %v2591_v29, %s2523_s14 }
 0x7de   :  { %1479 = vrot.lane.b32.xlu1 %v2594_v30, %s2523_s14 }
 0x84a   :  { %v1158_v2 = vpop.xlane.xlu1 %1157 }
 0x84b   :  { %2412 = vrcp.f32 %v1158_v2 }
 0x84e   :  { %v1161_v3 = vpop.xlane.xlu1 %1160 }
 0x84f   :  { %2414 = vrcp.f32 %v1161_v3 }
 0x852   :  { %v1243_v4 = vpop.permute.xlu1 %1242 }
 0x853   :  { %2268 = vmatpush3.msra.mxu1 %v1243_v4 }
 0x854   :  { %2277 = vmatprep.subr.mxu1 %v2512_v25 }
 0x855   :  { %v2413_v5 = vpop.eup %2412 }
 0x856   :  { %v1164_v6 = vmul.f32 %v2413_v5, %v2409_v59  ;;  %v1482_v8 = vpop.permute.xlu1 %1481  ;;  %v1849_v59 = vld [vmem:[#allocation5 + $0x68] sm:$0xff] }
 0x858   :  { %2265 = vmatmul.mubr.msk.f32.vlgmr.msra.gmra.mrb[8].mxu0 %vm164_vm2, %v1164_v6 }
 0x859   :  { %v2415_v7 = vpop.eup %2414  ;;  %2273 = vmatpush3.msra.mxu0 %v159_v63 }
 0x85a   :  { %v1165_v9 = vmul.f32 %v2415_v7, %v2411_v61  ;;  %2282 = vmatprep.subr.mxu0 %v2512_v25  ;;  %v1402_v11 = vpop.permute.xlu1 %1401  ;;  %v1851_v61 = vld [vmem:[#allocation5 + $0x78] sm:$0xff] }
 0x85b   :  { %v2344_v62 = vpack.c.bf16 %v1851_v61, %v1850_v60 }
 0x85c   :  { %2270 = vmatmul.mubr.msk.f32.vlgmr.msra.gmra.mrb[16].mxu1 %vm164_vm2, %v1165_v9  ;;  %v2116_v9 = vld [vmem:[#allocation5 + $0x58] ss:$0 sm:$0xff] }
 0x85d   :  { %2278 = vmatpush3.xpose.msk.msra.mxu1 %vm164_vm2, %v1404_v10  ;;  %2279 = vmatprep.mubr.msk.f32.mxu1 %vm2513_vm1, %v2512_v25 }
 0x85e   :  { %2287 = vmatprep.subr.mxu1 %v2512_v25  ;;  %v1480_v16 = vpop.permute.xlu1 %1479 }
 0x860   :  { %2280 = vmatmul.mubr.msk.f32.vlgmr.msra.gmra.mrb[18].mxu1 %vm164_vm2, %v1402_v11 }
 0x861   :  { %2289 = vmatprep.mubr.msk.f32.mxu1 %vm2513_vm1, %v2512_v25 }
 0x92b   :  { %v1238_v12 = vpop.f32.mrb[8].mxu0 }
 0x92c   :  { %v2266_v13 = vpop.f32.mrb[9].mxu0  ;;  %2274 = vmatprep.mubr.msk.f32.mxu0 %vm164_vm2, %v1238_v12 }
 0x92f   :  { %v1314_v14 = vpop.f32.mrb[16].mxu1 }
 0x930   :  { %v2271_v15 = vpop.f32.mrb[17].mxu1  ;;  %2275 = vmatmul.mubr.msk.f32.vlgmr.msra.gmra.mrb[6].mxu0 %vm164_vm2, %v1314_v14  ;;  %v1962_v14 = vld [vmem:[#allocation5 + $0x88] sm:$0xff] }
 0x931   :  { %2283 = vmatpush3.xpose.msk.msra.mxu0 %vm164_vm2, %v1482_v8  ;;  %2284 = vmatprep.mubr.msk.f32.mxu0 %vm2513_vm1, %v2512_v25  ;;  %v1963_v15 = vld [vmem:[#allocation5 + $0x90] sm:$0xff] }
 0x932   :  { %2292 = vmatprep.subr.mxu0 %v2512_v25 }
 0x933   :  { %v1475_v17 = vpop.f32.mrb[18].mxu1 }
 0x934   :  { %v1557_v18 = vmul.f32 0.35355338, %v1475_v17  ;;  %v2281_v19 = vpop.f32.mrb[19].mxu1  ;;  %2285 = vmatmul.mubr.msk.f32.vlgmr.msra.gmra.mrb[10].mxu0 %vm164_vm2, %v1480_v16  ;;  %v1964_v16 = vld [vmem:[#allocation5 + $0x98] sm:$0xff]  ;;  %v2348_v17 = vpack.c.bf16 %v1963_v15, %v1962_v14 }
 0x935   :  { %2294 = vmatprep.mubr.msk.f32.mxu0 %vm2513_vm1, %v2512_v25 }
 0x936   :  { %v1559_v20 = vsel %vm164_vm2, %v1557_v18, -inf }
 0x937   :  { %1560 = vmax.xlane.f32.xlu1 %v1559_v20  ;;  %v1966_v20 = vld [vmem:[#allocation5 + $0xa8] sm:$0xff] }
 0x9c4   :  { %v1561_v21 = vpop.xlane.xlu1 %1560 }
 0x9c5   :  { %v1565_v22 = vsub.f32 %v1557_v18, %v1561_v21  ;;  %v1965_v18 = vld [vmem:[#allocation5 + $0xa0] sm:$0xff]  ;;  %v1967_v21 = vld [vmem:[#allocation5 + $0xb0] sm:$0xff] }
 0x9c6   :  { %v2352_v19 = vpack.c.bf16 %v1965_v18, %v1964_v16 }
 0x9c7   :  { %v1567_v23 = vmul.f32 1.442695, %v1565_v22  ;;  %v2356_v22 = vpack.c.bf16 %v1967_v21, %v1966_v20 }
 0x9c9   :  { %2416 = vpow2.f32 %v1567_v23  ;;  %v1968_v23 = vld [vmem:[#allocation5 + $0xb8] sm:$0xff] }
 0x9d3   :  { %v2417_v24 = vpop.eup %2416 }
 0x9d4   :  { %v1571_v26 = vsel %vm164_vm2, %v2417_v24, 0.0 }
 0x9d5   :  { %1572 = vadd.xlane.f32.xlu1 %v1571_v26 }
 0xa07   :  { %v1553_v27 = vpop.f32.mrb[10].mxu0 }
 0xa08   :  { %v1558_v28 = vmul.f32 0.35355338, %v1553_v27  ;;  %v2286_v31 = vpop.f32.mrb[11].mxu0  ;;  %v2117_v27 = vld [vmem:[#allocation5 + $0x80] ss:$0 sm:$0xff] }
 0xa0a   :  { %v1562_v32 = vsel %vm164_vm2, %v1558_v28, -inf }
 0xa0b   :  { %1563 = vmax.xlane.f32.xlu0 %v1562_v32 }
 0xa21   :  { %1581 = vrot.lane.b32.xlu0 %v2591_v29, %s2524_s15  ;;  %v160_v29 = vld [vmem:[#allocation5 + $0x48] sm:$0xff] }
 0xa62   :  { %v1573_v25 = vpop.xlane.xlu1 %1572 }
 0xa63   :  { %2418 = vrcp.f32 %v1573_v25 }
 0xa6d   :  { %v2419_v34 = vpop.eup %2418 }
 0xa6e   :  { %v1579_v37 = vmul.f32 %v2419_v34, %v2417_v24  ;;  %v1969_v24 = vld [vmem:[#allocation5 + $0xc0] sm:$0xff] }
 0xa6f   :  { %v2360_v26 = vpack.c.bf16 %v1969_v24, %v1968_v23 }
 0xa98   :  { %v1564_v33 = vpop.xlane.xlu0 %1563 }
 0xa99   :  { %v1566_v35 = vsub.f32 %v1558_v28, %v1564_v33 }
 0xa9b   :  { %v1569_v36 = vmul.f32 1.442695, %v1566_v35 }
 0xa9c   :  { %v1582_v38 = vpop.permute.xlu0 %1581 }
 0xa9d   :  { %2420 = vpow2.f32 %v1569_v36  ;;  %2288 = vmatpush3.msra.mxu1 %v1582_v38 }
 0xa9e   :  { %2290 = vmatmul.mubr.msk.f32.vlgmr.msra.gmra.mrb[20].mxu1 %vm164_vm2, %v1579_v37 }
 0xaa7   :  { %v2421_v39 = vpop.eup %2420 }
 0xaa8   :  { %v1574_v40 = vsel %vm164_vm2, %v2421_v39, 0.0 }
 0xaa9   :  { %1575 = vadd.xlane.f32.xlu1 %v1574_v40 }
 0xaba   :  { %1657 = vrot.lane.b32.xlu1 %v2594_v30, %s2524_s15 }
 0xb36   :  { %v1576_v41 = vpop.xlane.xlu1 %1575 }
 0xb37   :  { %2422 = vrcp.f32 %v1576_v41 }
 0xb3a   :  { %v1658_v42 = vpop.permute.xlu1 %1657 }
 0xb3b   :  { %2293 = vmatpush3.msra.mxu0 %v1658_v42 }
 0xb3c   :  { %2297 = vmatprep.subr.mxu0 %v160_v29 }
 0xb41   :  { %v2423_v43 = vpop.eup %2422 }
 0xb42   :  { %v1580_v44 = vmul.f32 %v2423_v43, %v2421_v39 }
 0xb44   :  { %2295 = vmatmul.mubr.msk.f32.vlgmr.msra.gmra.mrb[12].mxu0 %vm164_vm2, %v1580_v44 }
 0xb45   :  { %2298 = vmatpush3.msra.mxu0 %v160_v29 }
 0xb46   :  { %2349 = vmatprep.subr.bf16.mxu0 %v2348_v17 }
 0xb71   :  { %v1653_v45 = vpop.f32.mrb[20].mxu1 }
 0xb72   :  { %v2291_v46 = vpop.f32.mrb[21].mxu1  ;;  %2299 = vmatprep.mubr.msk.f32.mxu0 %vm164_vm2, %v1653_v45 }
 0xb73   :  { %v2122_v46 = vld [vmem:[#allocation5 + $0xc8] ss:$0 sm:$0xff] }
 0xc17   :  { %v1729_v47 = vpop.f32.mrb[12].mxu0 }
 0xc18   :  { %v2296_v48 = vpop.f32.mrb[13].mxu0  ;;  %2300 = vmatmul.mubr.msk.f32.vlgmr.msra.gmra.mrb[6].mxu0 %vm164_vm2, %v1729_v47 }
 0xc19   :  { %2351 = vmatpush3.bf16.msra.mxu0 %v2348_v17 }
 0xc1a   :  { %2353 = vmatprep.subr.bf16.mxu0 %v2352_v19 }
 0xc1d   :  { %2355 = vmatpush3.bf16.msra.mxu0 %v2352_v19 }
 0xc1e   :  { %2357 = vmatprep.subr.bf16.mxu0 %v2356_v22 }
 0xc21   :  { %2359 = vmatpush3.bf16.msra.mxu0 %v2356_v22 }
 0xc22   :  { %2361 = vmatprep.subr.bf16.mxu0 %v2360_v26 }
 0xc25   :  { %2363 = vmatpush3.bf16.msra.mxu0 %v2360_v26 }
 0xceb   :  { %v2301_v30 = vpop.f32.mrb[6].mxu0 }
 0xcec   :  { %v1817_v50 = vadd.f32 %v2301_v30, %v2573_v1  ;;  %v1805_v51 = vpop.f32.mrb[7].mxu0  ;;  %v1848_v1 = vld [vmem:[#allocation5 + $0x60] sm:$0xff] }
 0xced   :  { %v1816_v52 = vadd.f32 %v1805_v51, %v2571_v0  ;;  %v2340_v0 = vpack.c.bf16 %v1849_v59, %v1848_v1 }
 0xcee   :  { %v2719_v53 = vadd.f32 %v2115_v49, %v1817_v50 }
 0xcef   :  { %v2721_v54 = vadd.f32 %v2115_v49, %v1816_v52  ;;  %2341 = vmatprep.subr.bf16.mxu1 %v2340_v0 }
 0xcf0   :  { %v1827_v55 = vmul.f32 %v2719_v53, %v2719_v53  ;;  %2343 = vmatpush3.bf16.msra.mxu1 %v2340_v0 }
 0xcf1   :  { %v1826_v56 = vmul.f32 %v2721_v54, %v2721_v54  ;;  %2345 = vmatprep.subr.bf16.mxu1 %v2344_v62 }
 0xcf2   :  { %v1831_v57 = vsel %vm45_vm0, %v1827_v55, 0.0 }
 0xcf3   :  { %1832 = vadd.xlane.f32.xlu0 %v1831_v57  ;;  %v1828_v58 = vsel %vm45_vm0, %v1826_v56, 0.0 }
 0xcf4   :  { %1829 = vadd.xlane.f32.xlu1 %v1828_v58  ;;  %2347 = vmatpush3.bf16.msra.mxu1 %v2344_v62 }
 0xd80   :  { %v1833_v63 = vpop.xlane.xlu0 %1832 }
 0xd81   :  { %v1835_v2 = vmul.f32 0.03125, %v1833_v63  ;;  %v1830_v3 = vpop.xlane.xlu1 %1829 }
 0xd82   :  { %v1834_v4 = vmul.f32 0.03125, %v1830_v3 }
 0xd83   :  { %v1837_v5 = vadd.f32 1e-06, %v1835_v2 }
 0xd84   :  { %v1836_v6 = vadd.f32 1e-06, %v1834_v4 }
 0xd85   :  { %2424 = vrsqrt.f32 %v1837_v5 }
 0xd86   :  { %2426 = vrsqrt.f32 %v1836_v6 }
 0xd8f   :  { %v2425_v7 = vpop.eup %2424 }
 0xd90   :  { %v2427_v8 = vpop.eup %2426  ;;  %v1841_v10 = vmul.f32 %v2425_v7, %v2719_v53 }
 0xd91   :  { %v1840_v11 = vmul.f32 %v2427_v8, %v2721_v54 }
 0xd92   :  { %v1847_v13 = vmul.f32 %v2116_v9, %v1841_v10 }
 0xd93   :  { %v1846_v12 = vmul.f32 %v2116_v9, %v1840_v11 }
 0xd95   :  { %2310 = vmatprep.mubr.msk.f32.mxu1 %vm45_vm0, %v1846_v12 }
 0xd96   :  { %2311 = vmatmul.mubr.msk.f32.vlgmr.msra.gmra.mrb[22].mxu1 %vm45_vm0, %v1847_v13 }
 0xe69   :  { %v2312_v28 = vpop.f32.mrb[22].mxu1 }
 0xe6a   :  { %v1935_v31 = vadd.f32 %v2312_v28, %v2117_v27  ;;  %v1929_v32 = vpop.f32.mrb[23].mxu1 }
 0xe6b   :  { %v1930_v25 = vadd.f32 %v2117_v27, %v1929_v32 }
 0xe6c   :  { %1956 = vrot.lane.b32.xlu1 %v1935_v31, %s2515_s6  ;;  %v2121_v34 = vmul.f32 -1.442695, %v1935_v31 }
 0xe6d   :  { %1954 = vrot.lane.b32.xlu0 %v1930_v25, %s2515_s6  ;;  %v2120_v33 = vmul.f32 -1.442695, %v1930_v25 }
 0xe6f   :  { %2428 = vpow2.f32 %v2120_v33 }
 0xe70   :  { %2430 = vpow2.f32 %v2121_v34 }
 0xe79   :  { %v2429_v35 = vpop.eup %2428 }
 0xe7a   :  { %v2431_v36 = vpop.eup %2430  ;;  %v1944_v37 = vadd.f32 1.0, %v2429_v35 }
 0xe7b   :  { %v1945_v38 = vadd.f32 1.0, %v2431_v36 }
 0xe7c   :  { %2432 = vrcp.f32 %v1944_v37 }
 0xe7d   :  { %2434 = vrcp.f32 %v1945_v38 }
 0xe86   :  { %v2433_v39 = vpop.eup %2432 }
 0xe87   :  { %v2435_v40 = vpop.eup %2434  ;;  %v1950_v29 = vmul.f32 %v2433_v39, %v1930_v25 }
 0xe88   :  { %v1951_v42 = vmul.f32 %v2435_v40, %v1935_v31 }
 0xede   :  { %v1957_v41 = vpop.permute.xlu1 %1956 }
 0xedf   :  { %v1955_v43 = vpop.permute.xlu0 %1954  ;;  %v1961_v45 = vmul.f32 %v1957_v41, %v1951_v42 }
 0xee0   :  { %v1960_v44 = vmul.f32 %v1955_v43, %v1950_v29 }
 0xee2   :  { %2329 = vmatprep.mubr.msk.f32.mxu0 %vm1975_vm3, %v1960_v44 }
 0xee3   :  { %2330 = vmatmul.mubr.msk.f32.vlgmr.msra.gmra.mrb[14].mxu0 %vm1975_vm3, %v1961_v45 }
 0xfb6   :  { %v2331_v47 = vpop.f32.mrb[14].mxu0 }
 0xfb7   :  { %v2054_v48 = vadd.f32 %v2331_v47, %v2122_v46  ;;  %v2048_v30 = vpop.f32.mrb[15].mxu0 }
 0xfb8   :  { %v2049_v49 = vadd.f32 %v2122_v46, %v2048_v30 }
 0xfb9   :  { %v2058_v50 = vadd.f32 %v2054_v48, %v2719_v53 }
 0xfba   :  { %v2057_v51 = vadd.f32 %v2049_v49, %v2721_v54 }
 0xfbb   :  { %2060 = vst.msk [vmem:[#allocation7 + $0x8] sm:$0xff] %vm45_vm0, %v2058_v50 }
 0xfbc   :  { %2059 = vst.msk [vmem:[#allocation7] sm:$0xff] %vm45_vm0, %v2057_v51 }
 0xfbd   :  { %2491 = shalt.err (!%p2488_p6)
}
 0xfbe   :  { %s2492_s23 = scalar_lea.hbm %s2756_s2, 256 }
 0xfbf   :  { %p2493_p7 = scmp.ne.s32.totalorder %s2756_s2, %s2492_s23  ;;  %p2496_p8 = scmp.lt.u32.totalorder %s2492_s23, %s2756_s2 }
 0xfc1   :  { %p2498_p9 = pnand %p2496_p8, %p2493_p7 }
 0xfc3   :  { %2501 = shalt.err (!%p2498_p9)
}
 0xfc4   :  { %2072 = dma.vmem_to_hbm [thread:$0]  %s2067_s17, 256, %s2756_s2, [#allocation4], %s2509_s19, %s2509_s19, %s2510_s20  }
 0xfc5   :  { %2506 = dma.done.wait [#allocation4], 256  }
 0xfc6   :  { %2507 = vsyncadd [#allocation4], 4294967040 }
 0xfc7   :  { %2076 = vsyncpa [#allocation3], 1 }
 0xfc8   :  { %2077 = vsyncpa [#allocation6], 1 }
 0xfc9   :  { %2078 = vsyncpa [#allocation4], 1 }

</bundles_post_ra>
